<compile_context>
chip_gen: v6e
topology: v6e:2x2x1
jax: 0.10.0
libtpu: 0.0.40
codegen_flags: <defaults>
</compile_context>

<pallas_src>
import jax
import jax.numpy as jnp
from jax.experimental import pallas as pl
from jax.experimental.pallas import tpu as pltpu


# ---------------------------------------------------------------------------
# kernels
# ---------------------------------------------------------------------------
def _msf_kernel_lane_samples(x_ref, p_ref, o_ref):
    """Lane-dense layout for num_hat not a multiple of 128.

    x_ref : (d, TILE_S)   samples on the lane axis
    p_ref : (H, 4)        packed per-hat constants [k0, k2, 1/(k1-k0), 1/(k2-k1)]
    o_ref : (H, TILE_S)   output block (hats on sublanes, samples on lanes)
    """
    x = x_ref[...].astype(jnp.float32)                    # (d, S)
    p = p_ref[...].astype(jnp.float32)                    # (H, 4)
    k0 = p[:, 0:1]                                        # (H, 1)
    k2 = p[:, 1:2]
    ca = p[:, 2:3]
    cb = p[:, 3:4]

    d = x.shape[0]
    result = None
    # d is the module's input dimension (small); unrolled at trace time.
    # TODO(synk): move the dim loop to a grid axis / fori_loop if d grows large.
    for dim in range(d):
        xd = x[dim:dim + 1, :]                            # (1, S)
        rise = (xd - k0) * ca                             # (H, S)
        fall = (k2 - xd) * cb                             # (H, S)
        acc = jnp.maximum(jnp.minimum(rise, fall), 0.0)   # hat + clamp(min=0)
        result = acc if result is None else jnp.minimum(result, acc)
    o_ref[...] = result.astype(o_ref.dtype)


def _msf_kernel_lane_hats(x_ref, p_ref, o_ref):
    """Natural layout for num_hat that is a multiple of 128 (already lane-dense).

    x_ref : (TILE_S, d)
    p_ref : (4, H)        rows: k0, k2, 1/(k1-k0), 1/(k2-k1)
    o_ref : (TILE_S, H)
    """
    x = x_ref[...].astype(jnp.float32)                    # (S, d)
    p = p_ref[...].astype(jnp.float32)                    # (4, H)
    k0 = p[0:1, :]                                        # (1, H)
    k2 = p[1:2, :]
    ca = p[2:3, :]
    cb = p[3:4, :]

    d = x.shape[1]
    result = None
    for dim in range(d):
        xd = x[:, dim:dim + 1]                            # (S, 1)
        acc = jnp.maximum(jnp.minimum((xd - k0) * ca, (k2 - xd) * cb), 0.0)
        result = acc if result is None else jnp.minimum(result, acc)
    o_ref[...] = result.astype(o_ref.dtype)


# ---------------------------------------------------------------------------
# wrapper
# ---------------------------------------------------------------------------
_VMEM_TILE_BUDGET = 8 * 1024 * 1024    # per-step I/O + intermediates budget (bytes)
_VMEM_LIMIT_BYTES = 32 * 1024 * 1024   # explicit scoped-VMEM limit; safe v5e..v7x
_MAX_TILE_S = 32768                    # sample-tile ceiling


def _round_up(n, m):
    return ((n + m - 1) // m) * m


def _pick_tile_s(num_sample, align, bytes_per_row):
    """Sample-tile size: as large as the VMEM budget allows, while keeping
    padding waste small; avoid a single-step grid where possible so v7x's two
    TensorCores both get work."""
    needed = _round_up(max(num_sample, 1), align)
    cands = [align]
    t = align * 2
    while t <= _MAX_TILE_S and t * bytes_per_row <= _VMEM_TILE_BUDGET:
        cands.append(t)
        t *= 2

    slack = max(int(0.15 * num_sample), align)
    ok = [t for t in cands if _round_up(needed, t) - num_sample <= slack]
    if ok:
        tile = max(ok)
    else:
        tile = min(cands, key=lambda c: (_round_up(needed, c), -c))

    # v7x megacore: split a single-step grid if we can do so without dropping
    # below the lane/sublane alignment.
    if _round_up(needed, tile) // tile == 1 and tile >= 2 * align:
        tile //= 2
    return tile


def msf_forward(x, knots, num_hat, d, out_layout="sh"):
    """x: (num_sample * d, 1) float32 (same layout as the PyTorch hat input).

    out_layout="sh" returns (num_sample, num_hat) like the PyTorch module.
    out_layout="hs" returns (num_hat, num_sample) and, for num_hat < 128,
    skips an extra full HBM read+write (the output transpose).
    Precondition: sorted knots must be strictly increasing per hat (degenerate
    knots give inf/NaN, same as the PyTorch reference).
    """
    assert x.shape[0] % d == 0, "x rows must be a multiple of d"
    H = num_hat
    num_sample = x.shape[0] // d

    # ---- glue: sort knots, build 2-segment hat constants (mirrors FreeKnotHat)
    k_sorted = jnp.sort(knots, axis=1).astype(jnp.float32)      # (H, 3)
    k0, k1, k2 = k_sorted[:, 0:1], k_sorted[:, 1:2], k_sorted[:, 2:3]
    ca = 1.0 / (k1 - k0)
    cb = 1.0 / (k2 - k1)
    params = jnp.concatenate([k0, k2, ca, cb], axis=1)           # (H, 4)

    x2 = x.reshape(num_sample, d).astype(jnp.float32)            # == torch reshape

    # per-sample-row f32 footprint: double-buffered input (d) + output (H)
    # blocks plus ~3 live (H,) intermediates.
    bytes_per_row = (2 * d + 2 * H + 3 * H) * 4

    if H % 128 == 0:
        # ------- hats already fill the lane axis: (samples, hats) layout -----
        tile_s = _pick_tile_s(num_sample, align=8, bytes_per_row=bytes_per_row)
        pad_s = _round_up(num_sample, tile_s)
        xp = x2 if pad_s == num_sample else jnp.pad(
            x2, ((0, pad_s - num_sample), (0, 0)))
        out = pl.pallas_call(
            _msf_kernel_lane_hats,
            out_shape=jax.ShapeDtypeStruct((pad_s, H), jnp.float32),
            grid=(pad_s // tile_s,),
            in_specs=[
                pl.BlockSpec((tile_s, d), lambda i: (i, 0)),
                pl.BlockSpec((4, H), lambda i: (0, 0)),
            ],
            out_specs=pl.BlockSpec((tile_s, H), lambda i: (i, 0)),
            compiler_params=pltpu.CompilerParams(
                dimension_semantics=("parallel",),
                vmem_limit_bytes=_VMEM_LIMIT_BYTES),
        )(xp, params.T)
        out = out[:num_sample]
        return out.T if out_layout == "hs" else out

    # ------- lane-dense path for H < 128 (or H not % 128): samples on lanes --
    tile_s = _pick_tile_s(num_sample, align=128, bytes_per_row=bytes_per_row)
    pad_s = _round_up(num_sample, tile_s)
    xp = x2 if pad_s == num_sample else jnp.pad(
        x2, ((0, pad_s - num_sample), (0, 0)))
    x_t = xp.T                                                   # (d, pad_s), tiny
    out_t = pl.pallas_call(
        _msf_kernel_lane_samples,
        out_shape=jax.ShapeDtypeStruct((H, pad_s), jnp.float32),
        grid=(pad_s // tile_s,),
        in_specs=[
            pl.BlockSpec((d, tile_s), lambda i: (0, i)),
            pl.BlockSpec((H, 4), lambda i: (0, 0)),
        ],
        out_specs=pl.BlockSpec((H, tile_s), lambda i: (0, i)),
        compiler_params=pltpu.CompilerParams(
            dimension_semantics=("parallel",),
            vmem_limit_bytes=_VMEM_LIMIT_BYTES),
    )(x_t, params)
    if out_layout == "hs":
        return out_t[:, :num_sample]
    # NOTE: this XLA-side transpose is an extra full HBM pass over the output;
    # consumers that can take the (num_hat, num_sample) layout should pass
    # out_layout="hs".
    return out_t[:, :num_sample].T


# ---------------------------------------------------------------------------
# pure-JAX reference (replicates the PyTorch forward exactly: relu-sum form)
# ---------------------------------------------------------------------------
def _msf_reference(x, knots, num_hat, d):
    k_sorted = jnp.sort(knots, axis=1)
    c1 = 1.0 / (k_sorted[:, 1:2] - k_sorted[:, 0:1])
    c2 = 1.0 / (k_sorted[:, 1:2] - k_sorted[:, 2:3]) - c1
    c3 = -(c1 + c2)
    W = jnp.concatenate([c1, c2, c3], axis=1)                    # (H, 3)

    y = jax.nn.relu(x - k_sorted.reshape(3 * num_hat))           # (N, 3*H)
    y = y.reshape(-1, num_hat, 3)
    y = jnp.sum(y * W[None, :, :], axis=-1)                      # grouped conv1d
    y = jnp.maximum(y.reshape(x.shape[0], num_hat), 0.0)         # clamp(min=0)
    y = y.reshape(-1, d, num_hat)
    return jnp.min(y, axis=1)


def _make_knots(key, num_hat, a, b):
    """Deterministic, well-separated knots inside [a, b].  Keeps the hat
    coefficients O(1) so the f32 comparison between the 2-segment kernel and
    the relu-sum reference is meaningful (tiny knot gaps make both forms
    ill-conditioned, as the PyTorch module itself is)."""
    kk1, kk2, kk3 = jax.random.split(key, 3)
    span = b - a
    k1 = a + span * jax.random.uniform(kk1, (num_hat, 1), minval=0.35, maxval=0.65)
    left = span * jax.random.uniform(kk2, (num_hat, 1), minval=0.10, maxval=0.30)
    right = span * jax.random.uniform(kk3, (num_hat, 1), minval=0.10, maxval=0.30)
    # arbitrary column order so the in-module sort is exercised
    return jnp.concatenate([k1, k1 + right, k1 - left], axis=1).astype(jnp.float32)


if __name__ == "__main__":
    key = jax.random.PRNGKey(0)
    a, b = 0.0, 1.0

    # ---- test 1: H < 128 (lane-dense transposed path), demo-sized ----------
    num_hat, d, num_sample = 8, 2, 16
    k1k, k2k, key = jax.random.split(key, 3)
    x = jax.random.uniform(k1k, (num_sample * d, 1), minval=a, maxval=b,
                           dtype=jnp.float32)
    knots = _make_knots(k2k, num_hat, a, b)
    out = jax.block_until_ready(msf_forward(x, knots, num_hat, d))
    ref = _msf_reference(x, knots, num_hat, d)
    assert out.shape == (num_sample, num_hat)
    assert jnp.allclose(out, ref, atol=1e-4, rtol=1e-4), (
        f"max abs diff {jnp.max(jnp.abs(out - ref))}")
    # transpose-free layout option
    out_hs = jax.block_until_ready(msf_forward(x, knots, num_hat, d,
                                               out_layout="hs"))
    assert out_hs.shape == (num_hat, num_sample)
    assert jnp.allclose(out_hs.T, ref, atol=1e-4, rtol=1e-4)

    # ---- test 2: H multiple of 128 (natural (S, H) layout path) ------------
    num_hat2, d2, num_sample2 = 128, 3, 64
    k3k, k4k, key = jax.random.split(key, 3)
    x2 = jax.random.uniform(k3k, (num_sample2 * d2, 1), minval=a, maxval=b,
                            dtype=jnp.float32)
    knots2 = _make_knots(k4k, num_hat2, a, b)
    out2 = jax.block_until_ready(msf_forward(x2, knots2, num_hat2, d2))
    ref2 = _msf_reference(x2, knots2, num_hat2, d2)
    assert out2.shape == (num_sample2, num_hat2)
    assert jnp.allclose(out2, ref2, atol=1e-4, rtol=1e-4), (
        f"max abs diff {jnp.max(jnp.abs(out2 - ref2))}")

    print("KERNEL_OK")
</pallas_src>

<mosaic_0001>
module attributes {stable_mosaic.version = 11 : i64} {
  func.func @_msf_kernel_lane_samples(%arg0: i32, %arg1: memref<2x128xf32, #tpu.memory_space<vmem>>, %arg2: memref<8x4xf32, #tpu.memory_space<vmem>>, %arg3: memref<8x128xf32, #tpu.memory_space<vmem>>) attributes {dimension_semantics = [#tpu.dimension_semantics<parallel>], iteration_bounds = array<i64: 1>, scalar_prefetch = 0 : i64, scratch_operands = 0 : i64, tpu.core_type = #tpu.core_type<tc>, window_params = [{transform_indices = @transform_0, window_bounds = array<i64: 2, 128>}, {pipeline_mode = #tpu.pipeline_mode<synchronous>, transform_indices = @transform_1, window_bounds = array<i64: 8, 4>}, {transform_indices = @transform_2, window_bounds = array<i64: 8, 128>}]} {
    %c0 = arith.constant 0 : index
    %c0_0 = arith.constant 0 : index
    %0 = vector.load %arg1[%c0, %c0_0] : memref<2x128xf32, #tpu.memory_space<vmem>>, vector<2x128xf32>
    %c0_1 = arith.constant 0 : index
    %c0_2 = arith.constant 0 : index
    %1 = vector.load %arg2[%c0_1, %c0_2] : memref<8x4xf32, #tpu.memory_space<vmem>>, vector<8x4xf32>
    %2 = vector.extract_strided_slice %1 {offsets = [0, 0], sizes = [8, 1], strides = [1, 1]} : vector<8x4xf32> to vector<8x1xf32>
    %3 = vector.extract_strided_slice %1 {offsets = [0, 1], sizes = [8, 1], strides = [1, 1]} : vector<8x4xf32> to vector<8x1xf32>
    %4 = vector.extract_strided_slice %1 {offsets = [0, 2], sizes = [8, 1], strides = [1, 1]} : vector<8x4xf32> to vector<8x1xf32>
    %5 = vector.extract_strided_slice %1 {offsets = [0, 3], sizes = [8, 1], strides = [1, 1]} : vector<8x4xf32> to vector<8x1xf32>
    %6 = vector.extract_strided_slice %0 {offsets = [0, 0], sizes = [1, 128], strides = [1, 1]} : vector<2x128xf32> to vector<1x128xf32>
    %7 = vector.broadcast %6 : vector<1x128xf32> to vector<8x128xf32>
    %8 = vector.broadcast %2 : vector<8x1xf32> to vector<8x128xf32>
    %9 = arith.subf %7, %8 : vector<8x128xf32>
    %10 = vector.broadcast %4 : vector<8x1xf32> to vector<8x128xf32>
    %11 = arith.mulf %9, %10 : vector<8x128xf32>
    %12 = vector.broadcast %3 : vector<8x1xf32> to vector<8x128xf32>
    %13 = vector.broadcast %6 : vector<1x128xf32> to vector<8x128xf32>
    %14 = arith.subf %12, %13 : vector<8x128xf32>
    %15 = vector.broadcast %5 : vector<8x1xf32> to vector<8x128xf32>
    %16 = arith.mulf %14, %15 : vector<8x128xf32>
    %17 = arith.minimumf %11, %16 : vector<8x128xf32>
    %cst = arith.constant 0.000000e+00 : f32
    %18 = vector.broadcast %cst : f32 to vector<8x128xf32>
    %19 = arith.maximumf %17, %18 : vector<8x128xf32>
    %20 = vector.extract_strided_slice %0 {offsets = [1, 0], sizes = [1, 128], strides = [1, 1]} : vector<2x128xf32> to vector<1x128xf32>
    %21 = vector.broadcast %20 : vector<1x128xf32> to vector<8x128xf32>
    %22 = vector.broadcast %2 : vector<8x1xf32> to vector<8x128xf32>
    %23 = arith.subf %21, %22 : vector<8x128xf32>
    %24 = vector.broadcast %4 : vector<8x1xf32> to vector<8x128xf32>
    %25 = arith.mulf %23, %24 : vector<8x128xf32>
    %26 = vector.broadcast %3 : vector<8x1xf32> to vector<8x128xf32>
    %27 = vector.broadcast %20 : vector<1x128xf32> to vector<8x128xf32>
    %28 = arith.subf %26, %27 : vector<8x128xf32>
    %29 = vector.broadcast %5 : vector<8x1xf32> to vector<8x128xf32>
    %30 = arith.mulf %28, %29 : vector<8x128xf32>
    %31 = arith.minimumf %25, %30 : vector<8x128xf32>
    %cst_3 = arith.constant 0.000000e+00 : f32
    %32 = vector.broadcast %cst_3 : f32 to vector<8x128xf32>
    %33 = arith.maximumf %31, %32 : vector<8x128xf32>
    %34 = arith.minimumf %19, %33 : vector<8x128xf32>
    %c0_4 = arith.constant 0 : index
    %c0_5 = arith.constant 0 : index
    %35 = vector.load %arg3[%c0_4, %c0_5] : memref<8x128xf32, #tpu.memory_space<vmem>>, vector<8x128xf32>
    tpu.vector_store %arg3[%c0_4, %c0_5], %34 {strides = array<i32>} : memref<8x128xf32, #tpu.memory_space<vmem>>, vector<8x128xf32>,
    return
  }
  func.func @transform_0(%arg0: i32) -> (i32, i32) {
    %c0_i32 = arith.constant 0 : i32
    %c0_i32_0 = arith.constant 0 : i32
    return %c0_i32, %arg0 : i32, i32
  }
  func.func @transform_1(%arg0: i32) -> (i32, i32) {
    %c0_i32 = arith.constant 0 : i32
    %c0_i32_0 = arith.constant 0 : i32
    %c0_i32_1 = arith.constant 0 : i32
    return %c0_i32, %c0_i32_0 : i32, i32
  }
  func.func @transform_2(%arg0: i32) -> (i32, i32) {
    %c0_i32 = arith.constant 0 : i32
    %c0_i32_0 = arith.constant 0 : i32
    return %c0_i32, %arg0 : i32, i32
  }
}

</mosaic_0001>

<bundles_post_ra>
// kernel: tpu_custom_call.1
= control target key start
LH: loop header
LB: loop body
LE: loop exit
PB: predicated region body
PF: predicated region fallthrough
CT: control target
= control target key end

     0   :  { %v99_v1 = vmov 0   ;;  %v100_v2 = vmov 2   ;;  %s128_s0 = inlined_call_operand.vmem [shape: f32[2,128], index: 0, kind: input, shape index: {}]   ;;  %s129_s1 = inlined_call_operand.vmem [shape: f32[8,4], index: 1, kind: input, shape index: {}]   ;;  %s130_s2 = inlined_call_operand.hbm [shape: f32[8,128], index: 2, kind: output, shape index: {}]  }
   0x1   :  { %v13_v0 = vld [vmem:[%s129_s1] sm:$0xff]  ;;  %72 = vset.pattern.permute.xlu0 %v99_v1  ;;  %74 = vset.pattern.permute.xlu1 %v100_v2 }
   0x2   :  { %7 = vsyncpa [#allocation3], 0  ;;  %20 = vperm.xlu0 %72, %v13_v0   ;;  %25 = vperm.xlu1 %74, %v13_v0   ;;  %v101_v3 = vmov 1   ;;  %v102_v4 = vmov 3   ;;  %v14_v5 = vlaneseq  ;;  %v12_v9 = vld [vmem:[%s128_s0] sm:$0x3] }
   0x3   :  { %s103_s12 = smov [#allocation2]  }
   0x4   :  { %v15_v6 = vshrl.u32 %v14_v5, 7  ;;  %s59_s13 = sshll.u32 %s103_s12, 4  ;;  %s60_s13 = int_to_ptr.vmem [resolvable:$true] %s59_s13 }
   0x5   :  { %s77_s0 = scalar_lea.vmem %s60_s13, 128  ;;  %p82_p1 = scmp.lt.s32.totalorder %s60_s13, %s60_s13 }
   0x6   :  { %73 = vset.pattern.permute.xlu0 %v101_v3  ;;  %75 = vset.pattern.permute.xlu1 %v102_v4  ;;  %v16_v7 = vsub.s32 0, %v15_v6  ;;  %v43_v8 = vsub.s32 1, %v15_v6  ;;  %p78_p0 = scmp.ne.s32.totalorder %s60_s13, %s77_s0  ;;  %p83_p2 = scmp.lt.s32.totalorder %s77_s0, %s77_s0 }
   0x7   :  { %30 = vperm.xlu0 %73, %v13_v0   ;;  %35 = vperm.xlu1 %75, %v13_v0  }
   0x8   :  { %v17_v11 = vrot.slane %v12_v9, %v16_v7  ;;  %v44_v12 = vrot.slane %v12_v9, %v43_v8  ;;  %p84_p3 = por %p83_p2, %p82_p1 }
   0xa   :  { %p85_p4 = pnand %p84_p3, %p78_p0 }
   0xb   :  { %76 = vset.pattern.permute.xlu0 %v102_v4 }
  0x7d   :  { %v21_v10 = vpop.permute.xlu0 %20  ;;  %v26_v13 = vpop.permute.xlu1 %25 }
  0x7e   :  { %v23_v14 = vsub.f32 %v17_v11, %v21_v10  ;;  %v45_v15 = vsub.f32 %v44_v12, %v21_v10 }
  0x80   :  { %v28_v20 = vmul.f32 %v26_v13, %v23_v14  ;;  %v46_v21 = vmul.f32 %v45_v15, %v26_v13 }
  0x82   :  { %v31_v16 = vpop.permute.xlu0 %30  ;;  %v36_v17 = vpop.permute.xlu1 %35 }
  0x83   :  { %v33_v18 = vsub.f32 %v31_v16, %v17_v11  ;;  %v47_v19 = vsub.f32 %v31_v16, %v44_v12 }
  0x85   :  { %v38_v22 = vmul.f32 %v36_v17, %v33_v18  ;;  %v48_v23 = vmul.f32 %v47_v19, %v36_v17 }
  0x87   :  { %v39_v24 = vmin.f32 %v28_v20, %v38_v22  ;;  %v49_v25 = vmin.f32 %v46_v21, %v48_v23 }
  0x89   :  { %v40_v26 = vmax.f32 %v39_v24, 0.0  ;;  %v50_v27 = vmax.f32 %v49_v25, 0.0 }
  0x8b   :  { %v51_v28 = vmin.f32 %v40_v26, %v50_v27 }
  0x8d   :  { %52 = vst [vmem:[#allocation2] sm:$0xff] %v51_v28 }
  0x8e   :  { %88 = shalt.err (!%p85_p4)
}
  0x8f   :  { %62 = dma.vmem_to_hbm [thread:$0]  %s60_s13, 128, %s130_s2, [#allocation3]  }
  0x90   :  { %97 = dma.done.wait [#allocation3], 128  }
  0x91   :  { %98 = vsyncadd [#allocation3], 4294967168 }
  0x92   :  { %66 = vsyncpa [#allocation3], 1 }

</bundles_post_ra>
